<compile_context>
chip_gen: v7x
topology: tpu7x:2x2x1
jax: 0.10.0
libtpu: 0.0.40
codegen_flags: <defaults>
</compile_context>

<pallas_src>
import numpy as np
import jax
import jax.numpy as jnp
from jax import lax
from jax.experimental import pallas as pl
from jax.experimental.pallas import tpu as pltpu

# ----------------------------- problem sizes -------------------------------
B = 4            # batch
L0 = 24          # input sequence length -> after 3 stride-2 convs: L=3, 64*3=192
N_CLASSES = 24
FEAT = 192       # 64 * 3
OUT_LANES = 128  # lane-dense padded output width (classes 0..23, conc at 24)
EPS = 1e-5       # PyTorch BatchNorm1d default eps
CONV_CFG = [     # (C_out, C_in, stride), kernel_size=3, padding=1 everywhere
    (16, 1, 1),
    (32, 16, 2),
    (64, 32, 2),
    (64, 64, 2),
]


def conv_out_len(L, k=3, s=1, p=1):
    return (L + 2 * p - k) // s + 1


def _round_up(n, m):
    return ((n + m - 1) // m) * m


# --------------------- conv -> Toeplitz matrix (param setup glue) ----------
def conv1d_as_matrix(W, L_in, stride, pad=1):
    """Return M of shape (C_in*L_in, C_out*L_out) such that
    x_flat @ M == flatten(conv1d(x, W, stride, pad)) (channel-major flatten,
    no bias)."""
    C_out, C_in, K = W.shape
    L_out = conv_out_len(L_in, K, stride, pad)
    M = np.zeros((C_in * L_in, C_out * L_out), np.float32)
    for co in range(C_out):
        for ci in range(C_in):
            for k in range(K):
                w = W[co, ci, k]
                for l in range(L_out):
                    idx = l * stride + k - pad
                    if 0 <= idx < L_in:
                        M[ci * L_in + idx, co * L_out + l] += w
    return M, L_out


# ------------------------------- Pallas kernel ------------------------------
def cnn_kernel(x_ref, m1, s1, m2, s2, m3, s3, m4, s4, wh_ref, bh_ref, out_ref):
    def conv_bn_relu(h_bf16, m_ref, s_ref):
        # Conv weights + eval-mode BN scale are already folded into m_ref;
        # only the per-feature shift remains.  bf16 operands, f32 accumulate,
        # elementwise work in f32, return bf16 for the next MXU op.
        y = jnp.dot(h_bf16, m_ref[...], preferred_element_type=jnp.float32)
        return jnp.maximum(y + s_ref[...], 0.0).astype(jnp.bfloat16)

    h = x_ref[...].astype(jnp.bfloat16)  # (TB, L0) == (TB, 1*L0) flat
    h = conv_bn_relu(h, m1, s1)          # (TB, 16*24) = (TB, 384)
    h = conv_bn_relu(h, m2, s2)          # (TB, 32*12) = (TB, 384)
    h = conv_bn_relu(h, m3, s3)          # (TB, 64*6)  = (TB, 384)
    h = conv_bn_relu(h, m4, s4)          # (TB, 64*3)  = (TB, 192)

    # Fused heads: lanes 0..23 = mlpnet logits, lane 24 = concentration.
    fused = jnp.dot(h, wh_ref[...],
                    preferred_element_type=jnp.float32) + bh_ref[...]

    lane = lax.broadcasted_iota(jnp.int32, fused.shape, 1)
    is_cls = lane < N_CLASSES

    # LogSoftmax over class lanes only (masked reduction), all in f32.
    neg_inf = jnp.float32(-jnp.inf)
    mx = jnp.max(jnp.where(is_cls, fused, neg_inf), axis=1, keepdims=True)
    z = fused - mx
    p = jnp.where(is_cls, jnp.exp(z), 0.0)
    lse = jnp.log(jnp.sum(p, axis=1, keepdims=True))
    logp = z - lse

    # One lane-dense unmasked store: logp in lanes 0..23, conc in lane 24.
    out_ref[...] = jnp.where(is_cls, logp,
                             jnp.where(lane == N_CLASSES, fused, 0.0))


def cnn_forward(x, x0, mats, shifts, w_head, b_head):
    # x0 is an argument of the PyTorch forward but is unused there; keep parity.
    del x0
    bn = x.shape[0]
    # Batch tile: multiple of 8 sublanes; cap at 128 rows per tile so large
    # batches tile over a "parallel" grid axis (shards across v7x's 2 TCs).
    tb = min(128, _round_up(bn, 8))
    b_pad = _round_up(bn, tb)
    if b_pad != bn:
        x = jnp.pad(x, ((0, b_pad - bn), (0, 0)))
    grid = (b_pad // tb,)

    inputs = [x,
              mats[0], shifts[0],
              mats[1], shifts[1],
              mats[2], shifts[2],
              mats[3], shifts[3],
              w_head, b_head]

    def weight_spec(a):
        # Constant block index across the batch grid -> weights stay resident.
        return pl.BlockSpec(a.shape, lambda i, _nd=a.ndim: (0,) * _nd)

    in_specs = [pl.BlockSpec((tb, L0), lambda i: (i, 0))]
    in_specs += [weight_spec(a) for a in inputs[1:]]

    out = pl.pallas_call(
        cnn_kernel,
        grid=grid,
        in_specs=in_specs,
        out_specs=pl.BlockSpec((tb, OUT_LANES), lambda i: (i, 0)),
        out_shape=jax.ShapeDtypeStruct((b_pad, OUT_LANES), jnp.float32),
        compiler_params=pltpu.CompilerParams(
            dimension_semantics=("parallel",)),
    )(*inputs)

    logp = out[:bn, :N_CLASSES]
    conc = out[:bn, N_CLASSES:N_CLASSES + 1]
    return logp, conc


# ------------------------- deterministic parameter init ---------------------
def init_params(key):
    ks = list(jax.random.split(key, 32))
    nxt = iter(ks)

    def nrm(shape, scale=0.1):
        return scale * jax.random.normal(next(nxt), shape, dtype=jnp.float32)

    p = {}
    for li, (co, ci, _s) in enumerate(CONV_CFG):
        p[f"w{li}"] = nrm((co, ci, 3))
        p[f"b{li}"] = nrm((co,))
        p[f"gamma{li}"] = 1.0 + nrm((co,), 0.05)
        p[f"beta{li}"] = nrm((co,), 0.05)
        p[f"mean{li}"] = nrm((co,), 0.05)
        p[f"var{li}"] = 1.0 + jnp.abs(nrm((co,), 0.1))
    # Linear layers stored already as (in, out) so y = x @ W + b
    p["wm"] = nrm((FEAT, N_CLASSES))
    p["bm"] = nrm((N_CLASSES,))
    p["wc"] = nrm((FEAT, 1))
    p["bc"] = nrm((1,))
    return p


def build_kernel_inputs(params):
    """Fold conv bias + eval-mode BN into the Toeplitz matrices (scale) and a
    per-feature shift; fuse the two Linear heads into one lane-dense weight."""
    mats, shifts = [], []
    L = L0
    for li, (_co, _ci, s) in enumerate(CONV_CFG):
        W = np.asarray(params[f"w{li}"])
        M, L_out = conv1d_as_matrix(W, L, s)
        gamma = np.asarray(params[f"gamma{li}"])
        beta = np.asarray(params[f"beta{li}"])
        mu = np.asarray(params[f"mean{li}"])
        var = np.asarray(params[f"var{li}"])
        b = np.asarray(params[f"b{li}"])
        sc = gamma / np.sqrt(var + EPS)          # BN scale
        sh = (b - mu) * sc + beta                # conv bias + BN shift
        sc_v = np.repeat(sc, L_out)              # channel-major flatten
        sh_v = np.repeat(sh, L_out)
        M = M * sc_v[None, :]                    # fold scale into matrix cols
        mats.append(jnp.asarray(M, jnp.bfloat16))
        shifts.append(jnp.asarray(sh_v[None, :], jnp.float32))
        L = L_out

    # Fused, lane-dense head: [wm | wc | 0-pad] -> (192, 128).
    w_head = np.zeros((FEAT, OUT_LANES), np.float32)
    w_head[:, :N_CLASSES] = np.asarray(params["wm"])
    w_head[:, N_CLASSES] = np.asarray(params["wc"])[:, 0]
    b_head = np.zeros((1, OUT_LANES), np.float32)
    b_head[0, :N_CLASSES] = np.asarray(params["bm"])
    b_head[0, N_CLASSES] = np.asarray(params["bc"])[0]
    return (mats, shifts,
            jnp.asarray(w_head, jnp.bfloat16),
            jnp.asarray(b_head, jnp.float32))


# --------------------------- numpy reference (check) ------------------------
def conv1d_np(x, W, b, stride, pad=1):
    Bn, C_in, L_in = x.shape
    C_out, _, K = W.shape
    L_out = conv_out_len(L_in, K, stride, pad)
    xp = np.zeros((Bn, C_in, L_in + 2 * pad), np.float32)
    xp[:, :, pad:pad + L_in] = x
    y = np.zeros((Bn, C_out, L_out), np.float32)
    for l in range(L_out):
        seg = xp[:, :, l * stride:l * stride + K]          # (B, C_in, K)
        y[:, :, l] = np.einsum('bik,oik->bo', seg, W) + b[None, :]
    return y


def reference_forward(x, params):
    h = np.asarray(x)[:, None, :]                          # (B, 1, L) == unsqueeze(1)
    for li, (_co, _ci, s) in enumerate(CONV_CFG):
        W = np.asarray(params[f"w{li}"]); b = np.asarray(params[f"b{li}"])
        h = conv1d_np(h, W, b, s)
        g = np.asarray(params[f"gamma{li}"])[None, :, None]
        be = np.asarray(params[f"beta{li}"])[None, :, None]
        mu = np.asarray(params[f"mean{li}"])[None, :, None]
        var = np.asarray(params[f"var{li}"])[None, :, None]
        h = (h - mu) / np.sqrt(var + EPS) * g + be
        h = np.maximum(h, 0.0)
    feat = h.reshape(h.shape[0], -1)                       # flatten(1), channel-major
    logits = feat @ np.asarray(params["wm"]) + np.asarray(params["bm"])[None, :]
    mx = logits.max(axis=1, keepdims=True)
    z = logits - mx
    logp = z - np.log(np.exp(z).sum(axis=1, keepdims=True))
    conc = feat @ np.asarray(params["wc"]) + np.asarray(params["bc"])[None, :]
    return logp, conc


# ----------------------------------- main -----------------------------------
if __name__ == "__main__":
    key = jax.random.PRNGKey(0)
    k_param, k_x, k_x0 = jax.random.split(key, 3)

    params = init_params(k_param)
    mats, shifts, w_head, b_head = build_kernel_inputs(params)

    x = jax.random.normal(k_x, (B, L0), dtype=jnp.float32)
    x0 = jax.random.normal(k_x0, (B, 4), dtype=jnp.float32)   # unused by forward

    logp, conc = cnn_forward(x, x0, mats, shifts, w_head, b_head)
    logp = jax.block_until_ready(logp)
    conc = jax.block_until_ready(conc)

    ref_logp, ref_conc = reference_forward(x, params)
    assert np.allclose(np.asarray(logp), ref_logp, rtol=2e-2, atol=2e-2), \
        "logits mismatch vs reference"
    assert np.allclose(np.asarray(conc), ref_conc, rtol=2e-2, atol=2e-2), \
        "concentration mismatch vs reference"

    print("KERNEL_OK")
</pallas_src>

<mosaic_0001>
module attributes {stable_mosaic.version = 11 : i64} {
  func.func @cnn_kernel(%arg0: i32, %arg1: memref<8x24xf32, #tpu.memory_space<vmem>>, %arg2: memref<24x384xbf16, #tpu.memory_space<vmem>>, %arg3: memref<1x384xf32, #tpu.memory_space<vmem>>, %arg4: memref<384x384xbf16, #tpu.memory_space<vmem>>, %arg5: memref<1x384xf32, #tpu.memory_space<vmem>>, %arg6: memref<384x384xbf16, #tpu.memory_space<vmem>>, %arg7: memref<1x384xf32, #tpu.memory_space<vmem>>, %arg8: memref<384x192xbf16, #tpu.memory_space<vmem>>, %arg9: memref<1x192xf32, #tpu.memory_space<vmem>>, %arg10: memref<192x128xbf16, #tpu.memory_space<vmem>>, %arg11: memref<1x128xf32, #tpu.memory_space<vmem>>, %arg12: memref<8x128xf32, #tpu.memory_space<vmem>>) attributes {dimension_semantics = [#tpu.dimension_semantics<parallel>], iteration_bounds = array<i64: 1>, scalar_prefetch = 0 : i64, scratch_operands = 0 : i64, tpu.core_type = #tpu.core_type<tc>, window_params = [{transform_indices = @transform_0, window_bounds = array<i64: 8, 24>}, {pipeline_mode = #tpu.pipeline_mode<synchronous>, transform_indices = @transform_1, window_bounds = array<i64: 24, 384>}, {pipeline_mode = #tpu.pipeline_mode<synchronous>, transform_indices = @transform_2, window_bounds = array<i64: 1, 384>}, {pipeline_mode = #tpu.pipeline_mode<synchronous>, transform_indices = @transform_3, window_bounds = array<i64: 384, 384>}, {pipeline_mode = #tpu.pipeline_mode<synchronous>, transform_indices = @transform_4, window_bounds = array<i64: 1, 384>}, {pipeline_mode = #tpu.pipeline_mode<synchronous>, transform_indices = @transform_5, window_bounds = array<i64: 384, 384>}, {pipeline_mode = #tpu.pipeline_mode<synchronous>, transform_indices = @transform_6, window_bounds = array<i64: 1, 384>}, {pipeline_mode = #tpu.pipeline_mode<synchronous>, transform_indices = @transform_7, window_bounds = array<i64: 384, 192>}, {pipeline_mode = #tpu.pipeline_mode<synchronous>, transform_indices = @transform_8, window_bounds = array<i64: 1, 192>}, {pipeline_mode = #tpu.pipeline_mode<synchronous>, transform_indices = @transform_9, window_bounds = array<i64: 192, 128>}, {pipeline_mode = #tpu.pipeline_mode<synchronous>, transform_indices = @transform_10, window_bounds = array<i64: 1, 128>}, {transform_indices = @transform_11, window_bounds = array<i64: 8, 128>}]} {
    %c0 = arith.constant 0 : index
    %c0_0 = arith.constant 0 : index
    %0 = vector.load %arg1[%c0, %c0_0] : memref<8x24xf32, #tpu.memory_space<vmem>>, vector<8x24xf32>
    %1 = arith.truncf %0 : vector<8x24xf32> to vector<8x24xbf16>
    %c0_1 = arith.constant 0 : index
    %c0_2 = arith.constant 0 : index
    %2 = vector.load %arg2[%c0_1, %c0_2] : memref<24x384xbf16, #tpu.memory_space<vmem>>, vector<24x384xbf16>
    %cst = arith.constant dense<0.000000e+00> : vector<8x384xf32>
    %3 = tpu.matmul %1, %2, %cst {dimension_numbers = #tpu.dot_dimension_numbers<[1], [0], [0], [1], [0, 0, 1, 1], [], []>} : vector<8x24xbf16>, vector<24x384xbf16>, vector<8x384xf32> -> vector<8x384xf32>
    %c0_3 = arith.constant 0 : index
    %c0_4 = arith.constant 0 : index
    %4 = vector.load %arg3[%c0_3, %c0_4] : memref<1x384xf32, #tpu.memory_space<vmem>>, vector<1x384xf32>
    %5 = vector.broadcast %4 : vector<1x384xf32> to vector<8x384xf32>
    %6 = arith.addf %3, %5 : vector<8x384xf32>
    %cst_5 = arith.constant 0.000000e+00 : f32
    %7 = vector.broadcast %cst_5 : f32 to vector<8x384xf32>
    %8 = arith.maximumf %6, %7 : vector<8x384xf32>
    %9 = arith.truncf %8 : vector<8x384xf32> to vector<8x384xbf16>
    %c0_6 = arith.constant 0 : index
    %c0_7 = arith.constant 0 : index
    %10 = vector.load %arg4[%c0_6, %c0_7] : memref<384x384xbf16, #tpu.memory_space<vmem>>, vector<384x384xbf16>
    %cst_8 = arith.constant dense<0.000000e+00> : vector<8x384xf32>
    %11 = tpu.matmul %9, %10, %cst_8 {dimension_numbers = #tpu.dot_dimension_numbers<[1], [0], [0], [1], [0, 0, 1, 1], [], []>} : vector<8x384xbf16>, vector<384x384xbf16>, vector<8x384xf32> -> vector<8x384xf32>
    %c0_9 = arith.constant 0 : index
    %c0_10 = arith.constant 0 : index
    %12 = vector.load %arg5[%c0_9, %c0_10] : memref<1x384xf32, #tpu.memory_space<vmem>>, vector<1x384xf32>
    %13 = vector.broadcast %12 : vector<1x384xf32> to vector<8x384xf32>
    %14 = arith.addf %11, %13 : vector<8x384xf32>
    %cst_11 = arith.constant 0.000000e+00 : f32
    %15 = vector.broadcast %cst_11 : f32 to vector<8x384xf32>
    %16 = arith.maximumf %14, %15 : vector<8x384xf32>
    %17 = arith.truncf %16 : vector<8x384xf32> to vector<8x384xbf16>
    %c0_12 = arith.constant 0 : index
    %c0_13 = arith.constant 0 : index
    %18 = vector.load %arg6[%c0_12, %c0_13] : memref<384x384xbf16, #tpu.memory_space<vmem>>, vector<384x384xbf16>
    %cst_14 = arith.constant dense<0.000000e+00> : vector<8x384xf32>
    %19 = tpu.matmul %17, %18, %cst_14 {dimension_numbers = #tpu.dot_dimension_numbers<[1], [0], [0], [1], [0, 0, 1, 1], [], []>} : vector<8x384xbf16>, vector<384x384xbf16>, vector<8x384xf32> -> vector<8x384xf32>
    %c0_15 = arith.constant 0 : index
    %c0_16 = arith.constant 0 : index
    %20 = vector.load %arg7[%c0_15, %c0_16] : memref<1x384xf32, #tpu.memory_space<vmem>>, vector<1x384xf32>
    %21 = vector.broadcast %20 : vector<1x384xf32> to vector<8x384xf32>
    %22 = arith.addf %19, %21 : vector<8x384xf32>
    %cst_17 = arith.constant 0.000000e+00 : f32
    %23 = vector.broadcast %cst_17 : f32 to vector<8x384xf32>
    %24 = arith.maximumf %22, %23 : vector<8x384xf32>
    %25 = arith.truncf %24 : vector<8x384xf32> to vector<8x384xbf16>
    %c0_18 = arith.constant 0 : index
    %c0_19 = arith.constant 0 : index
    %26 = vector.load %arg8[%c0_18, %c0_19] : memref<384x192xbf16, #tpu.memory_space<vmem>>, vector<384x192xbf16>
    %cst_20 = arith.constant dense<0.000000e+00> : vector<8x192xf32>
    %27 = tpu.matmul %25, %26, %cst_20 {dimension_numbers = #tpu.dot_dimension_numbers<[1], [0], [0], [1], [0, 0, 1, 1], [], []>} : vector<8x384xbf16>, vector<384x192xbf16>, vector<8x192xf32> -> vector<8x192xf32>
    %c0_21 = arith.constant 0 : index
    %c0_22 = arith.constant 0 : index
    %28 = vector.load %arg9[%c0_21, %c0_22] : memref<1x192xf32, #tpu.memory_space<vmem>>, vector<1x192xf32>
    %29 = vector.broadcast %28 : vector<1x192xf32> to vector<8x192xf32>
    %30 = arith.addf %27, %29 : vector<8x192xf32>
    %cst_23 = arith.constant 0.000000e+00 : f32
    %31 = vector.broadcast %cst_23 : f32 to vector<8x192xf32>
    %32 = arith.maximumf %30, %31 : vector<8x192xf32>
    %33 = arith.truncf %32 : vector<8x192xf32> to vector<8x192xbf16>
    %c0_24 = arith.constant 0 : index
    %c0_25 = arith.constant 0 : index
    %34 = vector.load %arg10[%c0_24, %c0_25] : memref<192x128xbf16, #tpu.memory_space<vmem>>, vector<192x128xbf16>
    %cst_26 = arith.constant dense<0.000000e+00> : vector<8x128xf32>
    %35 = tpu.matmul %33, %34, %cst_26 {dimension_numbers = #tpu.dot_dimension_numbers<[1], [0], [0], [1], [0, 0, 1, 1], [], []>} : vector<8x192xbf16>, vector<192x128xbf16>, vector<8x128xf32> -> vector<8x128xf32>
    %c0_27 = arith.constant 0 : index
    %c0_28 = arith.constant 0 : index
    %36 = vector.load %arg11[%c0_27, %c0_28] : memref<1x128xf32, #tpu.memory_space<vmem>>, vector<1x128xf32>
    %37 = vector.broadcast %36 : vector<1x128xf32> to vector<8x128xf32>
    %38 = arith.addf %35, %37 : vector<8x128xf32>
    %39 = tpu.iota {dimensions = array<i32: 1>} : vector<8x128xi32>
    %c24_i32 = arith.constant 24 : i32
    %40 = vector.broadcast %c24_i32 : i32 to vector<8x128xi32>
    %41 = arith.cmpi slt, %39, %40 : vector<8x128xi32>
    %cst_29 = arith.constant 0xFF800000 : f32
    %42 = vector.broadcast %cst_29 : f32 to vector<8x128xf32>
    %43 = arith.select %41, %38, %42 : vector<8x128xi1>, vector<8x128xf32>
    %cst_30 = arith.constant dense<0xFF800000> : vector<8xf32>
    %44 = vector.multi_reduction <maximumf>, %43, %cst_30 [1] : vector<8x128xf32> to vector<8xf32>
    %45 = vector.shape_cast %44 : vector<8xf32> to vector<8x1xf32>
    %46 = vector.broadcast %45 : vector<8x1xf32> to vector<8x128xf32>
    %47 = arith.subf %38, %46 : vector<8x128xf32>
    %48 = math.exp %47 : vector<8x128xf32>
    %cst_31 = arith.constant 0.000000e+00 : f32
    %49 = vector.broadcast %cst_31 : f32 to vector<8x128xf32>
    %50 = arith.select %41, %48, %49 : vector<8x128xi1>, vector<8x128xf32>
    %cst_32 = arith.constant dense<0.000000e+00> : vector<8xf32>
    %51 = vector.multi_reduction <add>, %50, %cst_32 [1] : vector<8x128xf32> to vector<8xf32>
    %52 = vector.shape_cast %51 : vector<8xf32> to vector<8x1xf32>
    %53 = math.log %52 : vector<8x1xf32>
    %54 = vector.broadcast %53 : vector<8x1xf32> to vector<8x128xf32>
    %55 = arith.subf %47, %54 : vector<8x128xf32>
    %c24_i32_33 = arith.constant 24 : i32
    %56 = vector.broadcast %c24_i32_33 : i32 to vector<8x128xi32>
    %57 = arith.cmpi eq, %39, %56 : vector<8x128xi32>
    %cst_34 = arith.constant 0.000000e+00 : f32
    %58 = vector.broadcast %cst_34 : f32 to vector<8x128xf32>
    %59 = arith.select %57, %38, %58 : vector<8x128xi1>, vector<8x128xf32>
    %60 = arith.select %41, %55, %59 : vector<8x128xi1>, vector<8x128xf32>
    %c0_35 = arith.constant 0 : index
    %c0_36 = arith.constant 0 : index
    %61 = vector.load %arg12[%c0_35, %c0_36] : memref<8x128xf32, #tpu.memory_space<vmem>>, vector<8x128xf32>
    tpu.vector_store %arg12[%c0_35, %c0_36], %60 {strides = array<i32>} : memref<8x128xf32, #tpu.memory_space<vmem>>, vector<8x128xf32>,
    return
  }
  func.func @transform_0(%arg0: i32) -> (i32, i32) {
    %c0_i32 = arith.constant 0 : i32
    %c0_i32_0 = arith.constant 0 : i32
    return %arg0, %c0_i32 : i32, i32
  }
  func.func @transform_1(%arg0: i32) -> (i32, i32) {
    %c0_i32 = arith.constant 0 : i32
    %c0_i32_0 = arith.constant 0 : i32
    %c0_i32_1 = arith.constant 0 : i32
    return %c0_i32, %c0_i32_0 : i32, i32
  }
  func.func @transform_2(%arg0: i32) -> (i32, i32) {
    %c0_i32 = arith.constant 0 : i32
    %c0_i32_0 = arith.constant 0 : i32
    %c0_i32_1 = arith.constant 0 : i32
    return %c0_i32, %c0_i32_0 : i32, i32
  }
  func.func @transform_3(%arg0: i32) -> (i32, i32) {
    %c0_i32 = arith.constant 0 : i32
    %c0_i32_0 = arith.constant 0 : i32
    %c0_i32_1 = arith.constant 0 : i32
    return %c0_i32, %c0_i32_0 : i32, i32
  }
  func.func @transform_4(%arg0: i32) -> (i32, i32) {
    %c0_i32 = arith.constant 0 : i32
    %c0_i32_0 = arith.constant 0 : i32
    %c0_i32_1 = arith.constant 0 : i32
    return %c0_i32, %c0_i32_0 : i32, i32
  }
  func.func @transform_5(%arg0: i32) -> (i32, i32) {
    %c0_i32 = arith.constant 0 : i32
    %c0_i32_0 = arith.constant 0 : i32
    %c0_i32_1 = arith.constant 0 : i32
    return %c0_i32, %c0_i32_0 : i32, i32
  }
  func.func @transform_6(%arg0: i32) -> (i32, i32) {
    %c0_i32 = arith.constant 0 : i32
    %c0_i32_0 = arith.constant 0 : i32
    %c0_i32_1 = arith.constant 0 : i32
    return %c0_i32, %c0_i32_0 : i32, i32
  }
  func.func @transform_7(%arg0: i32) -> (i32, i32) {
    %c0_i32 = arith.constant 0 : i32
    %c0_i32_0 = arith.constant 0 : i32
    %c0_i32_1 = arith.constant 0 : i32
    return %c0_i32, %c0_i32_0 : i32, i32
  }
  func.func @transform_8(%arg0: i32) -> (i32, i32) {
    %c0_i32 = arith.constant 0 : i32
    %c0_i32_0 = arith.constant 0 : i32
    %c0_i32_1 = arith.constant 0 : i32
    return %c0_i32, %c0_i32_0 : i32, i32
  }
  func.func @transform_9(%arg0: i32) -> (i32, i32) {
    %c0_i32 = arith.constant 0 : i32
    %c0_i32_0 = arith.constant 0 : i32
    %c0_i32_1 = arith.constant 0 : i32
    return %c0_i32, %c0_i32_0 : i32, i32
  }
  func.func @transform_10(%arg0: i32) -> (i32, i32) {
    %c0_i32 = arith.constant 0 : i32
    %c0_i32_0 = arith.constant 0 : i32
    %c0_i32_1 = arith.constant 0 : i32
    return %c0_i32, %c0_i32_0 : i32, i32
  }
  func.func @transform_11(%arg0: i32) -> (i32, i32) {
    %c0_i32 = arith.constant 0 : i32
    %c0_i32_0 = arith.constant 0 : i32
    return %arg0, %c0_i32 : i32, i32
  }
}

</mosaic_0001>

<bundles_post_ra>
// kernel: tpu_custom_call.1
= control target key start
LH: loop header
LB: loop body
LE: loop exit
PB: predicated region body
PF: predicated region fallthrough
CT: control target
= control target key end

     0   :  { %16 = vsyncpa [#allocation3], 0  ;;  %s3421_s0 = inlined_call_operand.vmem [shape: f32[8,24], index: 0, kind: input, shape index: {}]   ;;  %s3422_s1 = inlined_call_operand.hbm [shape: bf16[24,384], index: 1, kind: input, shape index: {}]   ;;  %s3423_s2 = inlined_call_operand.vmem [shape: f32[1,384], index: 2, kind: input, shape index: {}]   ;;  %s3424_s3 = inlined_call_operand.vmem [shape: bf16[384,384], index: 3, kind: input, shape index: {}]   ;;  %s3425_s4 = inlined_call_operand.vmem [shape: f32[1,384], index: 4, kind: input, shape index: {}]   ;;  %s3426_s5 = inlined_call_operand.hbm [shape: bf16[384,384], index: 5, kind: input, shape index: {}]   ;;  %s3427_s6 = inlined_call_operand.vmem [shape: f32[1,384], index: 6, kind: input, shape index: {}]   ;;  %s3428_s7 = inlined_call_operand.vmem [shape: bf16[384,192], index: 7, kind: input, shape index: {}]   ;;  %s3429_s8 = inlined_call_operand.vmem [shape: f32[1,192], index: 8, kind: input, shape index: {}]   ;;  %s3430_s9 = inlined_call_operand.vmem [shape: bf16[192,128], index: 9, kind: input, shape index: {}]   ;;  %s3431_s10 = inlined_call_operand.vmem [shape: f32[1,128], index: 10, kind: input, shape index: {}]   ;;  %s3432_s11 = inlined_call_operand.hbm [shape: f32[8,128], index: 11, kind: output, shape index: {}]  }
   0x1   :  { %17 = vsyncpa [#allocation6], 0 }
   0x2   :  { %18 = vsyncpa [#allocation4], 0  ;;  %s2827_s17 = smov [#allocation2]   ;;  %s2755_s21 = scalar_lea.hbm %s3422_s1, 576 }
   0x3   :  { %s26_s18 = sshll.u32 %s2827_s17, 4  ;;  %p2756_p0 = scmp.ne.s32.totalorder %s3422_s1, %s2755_s21  ;;  %s27_s18 = int_to_ptr.vmem [resolvable:$true] %s26_s18 }
   0x4   :  { %p2759_p1 = scmp.lt.u32.totalorder %s2755_s21, %s3422_s1 }
   0x6   :  { %p2761_p2 = pnand %p2759_p1, %p2756_p0 }
   0x8   :  { %2764 = shalt.err (!%p2761_p2)
}
   0x9   :  { %s2765_s26 = scalar_lea.vmem %s27_s18, 576  ;;  %p2770_p4 = scmp.lt.s32.totalorder %s27_s18, %s27_s18 }
   0xa   :  { %p2766_p3 = scmp.ne.s32.totalorder %s27_s18, %s2765_s26  ;;  %p2771_p5 = scmp.lt.s32.totalorder %s2765_s26, %s2765_s26 }
   0xc   :  { %p2772_p6 = por %p2771_p5, %p2770_p4 }
   0xe   :  { %p2773_p7 = pnand %p2772_p6, %p2766_p3 }
  0x10   :  { %2776 = shalt.err (!%p2773_p7)
}
  0x11   :  { %s2828_s27 = smov 192   ;;  %s2829_s28 = smov 12  }
  0x12   :  { %32 = dma.hbm_to_vmem [thread:$0]  %s3422_s1, 576, %s27_s18, [#allocation3], %s2828_s27, %s2828_s27, %s2829_s28  }
  0x13   :  { %s2830_s12 = smov [#allocation5]   ;;  %s2777_s16 = scalar_lea.hbm %s3426_s5, 9216 }
  0x14   :  { %s44_s13 = sshll.u32 %s2830_s12, 4  ;;  %p2778_p8 = scmp.ne.s32.totalorder %s3426_s5, %s2777_s16  ;;  %s45_s13 = int_to_ptr.vmem [resolvable:$true] %s44_s13 }
  0x15   :  { %p2781_p9 = scmp.lt.u32.totalorder %s2777_s16, %s3426_s5 }
  0x17   :  { %p2783_p10 = pnand %p2781_p9, %p2778_p8 }
  0x19   :  { %2786 = shalt.err (!%p2783_p10)
}
  0x1a   :  { %s2787_s22 = scalar_lea.vmem %s45_s13, 9216  ;;  %p2792_p12 = scmp.lt.s32.totalorder %s45_s13, %s45_s13 }
  0x1b   :  { %p2788_p11 = scmp.ne.s32.totalorder %s45_s13, %s2787_s22  ;;  %p2793_p13 = scmp.lt.s32.totalorder %s2787_s22, %s2787_s22 }
  0x1d   :  { %p2794_p0 = por %p2793_p13, %p2792_p12 }
  0x1f   :  { %p2795_p1 = pnand %p2794_p0, %p2788_p11 }
  0x21   :  { %2798 = shalt.err (!%p2795_p1)
}
  0x22   :  { %50 = dma.hbm_to_vmem [thread:$0]  %s3426_s5, 9216, %s45_s13, [#allocation6], %s2828_s27, %s2828_s27, %s2829_s28  }
  0x23   :  { %2821 = dma.done.wait [#allocation3], 576  }
  0x24   :  { %2822 = vsyncadd [#allocation3], 4294966720 }
  0x25   :  { %2823 = dma.done.wait [#allocation6], 9216  }
  0x26   :  { %2824 = vsyncadd [#allocation6], 4294958080  ;;  %v2831_v0 = vmov 0   ;;  %v2468_v1 = vld [vmem:[#allocation2 + $0x4] ss:$12 sps:$4 sm:$0xff]   ;;  %v74_v3 = vld [vmem:[#allocation2 + $0x18] sm:$0xff]  ;;  %v78_v63 = vlaneseq }
  0x27   :  { %163 = vmatprep.mubr.bf16.mxu0 %v2831_v0  ;;  %788 = vmatprep.mubr.bf16.mxu1 %v2831_v0  ;;  %v2470_v2 = vld [vmem:[#allocation2] ss:$12 sps:$4 sm:$0xff]   ;;  %vm121_vm0 = vcmask 1043456   ;;  %v2120_v4 = vcombine.high %v74_v3, %v74_v3  ;;  %v2119_v5 = vcombine.low %v74_v3, %v74_v3  ;;  %vm117_vm1 = vcmask 195584   ;;  %v2473_v9 = vld [vmem:[#allocation2 + $0x8] ss:$12 sps:$4 sm:$0xff]  }
  0x28   :  { %131 = vmatprep.subr.bf16.mxu0 %v2468_v1  ;;  %v68_v6 = vld [vmem:[%s3421_s0] sm:$0xff]  ;;  %v2832_v10 = vmov 0.0   ;;  %vm2833_vm2 = vmmov 0   ;;  %v2480_v15 = vld [vmem:[%s3424_s3 + $0x1c] ss:$12 sps:$4 sm:$0xff]   ;;  %v79_v1 = vshrl.u32 %v78_v63, 7 }
  0x29   :  { %132 = vmatpush1.bf16.msra.mxu0 %v2470_v2  ;;  %v123_v7 = vsel %vm121_vm0, %v2119_v5, 0  ;;  %v69_v8 = vpack.c.bf16 %v68_v6, %v68_v6  ;;  %v2474_v11 = vld [vmem:[#allocation2 + $0x20] ss:$0 sps:$4 sm:$0xff]   ;;  %v2477_v13 = vld [vmem:[%s3424_s3 + $0x4] ss:$12 sps:$4 sm:$0xff]   ;;  %vm2037_vm3 = vcmask 523264  }
  0x2a   :  { %2122 = vmatprep.subr.msk.bf16.mxu0 %vm121_vm0, %v2120_v4  ;;  %v129_v12 = vsel %vm121_vm0, %v2474_v11, 0  ;;  %v2475_v14 = vld [vmem:[%s3424_s3] ss:$12 sps:$4 sm:$0xff]   ;;  %v2505_v16 = vld [vmem:[%s3424_s3 + $0x184] ss:$12 sps:$4 sm:$0xff]   ;;  %v3081_v2 = vsub.s32 0, %v79_v1 }
  0x2b   :  { %v2507_v17 = vld [vmem:[%s3424_s3 + $0x180] ss:$12 sps:$4 sm:$0xff]   ;;  %v2478_v18 = vld [vmem:[%s3424_s3 + $0x18] ss:$12 sps:$4 sm:$0xff]   ;;  %756 = vmatprep.subr.bf16.mxu1 %v2505_v16  ;;  %v2511_v20 = vld [vmem:[%s3424_s3 + $0x19c] ss:$12 sps:$4 sm:$0xff]  }
  0x2c   :  { %v2483_v19 = vld [vmem:[%s3424_s3 + $0x34] ss:$12 sps:$4 sm:$0xff]   ;;  %757 = vmatpush1.bf16.msra.mxu1 %v2507_v17  ;;  %v2513_v21 = vld [vmem:[%s3424_s3 + $0x198] ss:$12 sps:$4 sm:$0xff]   ;;  %v2481_v22 = vld [vmem:[%s3424_s3 + $0x30] ss:$12 sps:$4 sm:$0xff]  }
  0x2d   :  { %134 = vmatpush1.bf16.msra.mxu0 %v123_v7  ;;  %758 = vmatprep.subr.bf16.mxu1 %v2511_v20  ;;  %v2517_v23 = vld [vmem:[%s3424_s3 + $0x1b4] ss:$12 sps:$4 sm:$0xff]   ;;  %v2486_v24 = vld [vmem:[%s3424_s3 + $0x4c] ss:$12 sps:$4 sm:$0xff]   ;;  %v2519_v25 = vld [vmem:[%s3424_s3 + $0x1b0] ss:$12 sps:$4 sm:$0xff]  }
  0x2e   :  { %2396 = vmatprep.subr.bf16.mxu0 %v2832_v10  ;;  %v2523_v26 = vld [vmem:[%s3424_s3 + $0x1cc] ss:$12 sps:$4 sm:$0xff]   ;;  %v2484_v27 = vld [vmem:[%s3424_s3 + $0x48] ss:$12 sps:$4 sm:$0xff]   ;;  %v2489_v28 = vld [vmem:[%s3424_s3 + $0x64] ss:$12 sps:$4 sm:$0xff]  }
  0x2f   :  { %v2525_v29 = vld [vmem:[%s3424_s3 + $0x1c8] ss:$12 sps:$4 sm:$0xff]   ;;  %v2487_v30 = vld [vmem:[%s3424_s3 + $0x60] ss:$12 sps:$4 sm:$0xff]   ;;  %v2529_v31 = vld [vmem:[%s3424_s3 + $0x1e4] ss:$12 sps:$4 sm:$0xff]  }
  0x30   :  { %2123 = vmatmul.mubr.msk.bf16.vlgmr.msra.gmra.mrb[0].mxu0 %vm117_vm1, %v69_v8  ;;  %759 = vmatpush1.bf16.msra.mxu1 %v2513_v21  ;;  %v2492_v32 = vld [vmem:[%s3424_s3 + $0x7c] ss:$12 sps:$4 sm:$0xff]   ;;  %v2531_v33 = vld [vmem:[%s3424_s3 + $0x1e0] ss:$12 sps:$4 sm:$0xff]   ;;  %v2490_v34 = vld [vmem:[%s3424_s3 + $0x78] ss:$12 sps:$4 sm:$0xff]  }
  0x31   :  { %2397 = vmatpush3.bf16.msra.mxu0 %v2473_v9  ;;  %2400 = vmatprep.mubr.msk.bf16.mxu0 %vm2833_vm2, %v2832_v10  ;;  %v2495_v35 = vld [vmem:[%s3424_s3 + $0x94] ss:$12 sps:$4 sm:$0xff]   ;;  %v2493_v36 = vld [vmem:[%s3424_s3 + $0x90] ss:$12 sps:$4 sm:$0xff]   ;;  %v2498_v37 = vld [vmem:[%s3424_s3 + $0xac] ss:$12 sps:$4 sm:$0xff]  }
  0x32   :  { %2398 = vmatprep.subr.bf16.mxu0 %v2832_v10  ;;  %760 = vmatprep.subr.bf16.mxu1 %v2517_v23  ;;  %v2496_v38 = vld [vmem:[%s3424_s3 + $0xa8] ss:$12 sps:$4 sm:$0xff]   ;;  %v2501_v39 = vld [vmem:[%s3424_s3 + $0xc4] ss:$12 sps:$4 sm:$0xff]   ;;  %v2499_v40 = vld [vmem:[%s3424_s3 + $0xc0] ss:$12 sps:$4 sm:$0xff]  }
  0x33   :  { %v2504_v41 = vld [vmem:[%s3424_s3 + $0xdc] ss:$12 sps:$4 sm:$0xff]   ;;  %v2502_v42 = vld [vmem:[%s3424_s3 + $0xd8] ss:$12 sps:$4 sm:$0xff]   ;;  %v2510_v43 = vld [vmem:[%s3424_s3 + $0xf4] ss:$12 sps:$4 sm:$0xff]  }
  0x34   :  { %761 = vmatpush1.bf16.msra.mxu1 %v2519_v25  ;;  %v2508_v44 = vld [vmem:[%s3424_s3 + $0xf0] ss:$12 sps:$4 sm:$0xff]   ;;  %v2516_v45 = vld [vmem:[%s3424_s3 + $0x10c] ss:$12 sps:$4 sm:$0xff]   ;;  %v2514_v46 = vld [vmem:[%s3424_s3 + $0x108] ss:$12 sps:$4 sm:$0xff]  }
  0x35   :  { %2399 = vmatpush3.bf16.msra.mxu0 %v129_v12  ;;  %762 = vmatprep.subr.bf16.mxu1 %v2523_v26  ;;  %v2522_v47 = vld [vmem:[%s3424_s3 + $0x124] ss:$12 sps:$4 sm:$0xff]   ;;  %v2520_v48 = vld [vmem:[%s3424_s3 + $0x120] ss:$12 sps:$4 sm:$0xff]   ;;  %v2528_v49 = vld [vmem:[%s3424_s3 + $0x13c] ss:$12 sps:$4 sm:$0xff]  }
  0x36   :  { %715 = vmatprep.subr.bf16.mxu0 %v2477_v13  ;;  %v2526_v50 = vld [vmem:[%s3424_s3 + $0x138] ss:$12 sps:$4 sm:$0xff]   ;;  %v2534_v51 = vld [vmem:[%s3424_s3 + $0x154] ss:$12 sps:$4 sm:$0xff]   ;;  %v2532_v52 = vld [vmem:[%s3424_s3 + $0x150] ss:$12 sps:$4 sm:$0xff]  }
  0x37   :  { %v2535_v53 = vld [vmem:[%s3424_s3 + $0x1fc] ss:$12 sps:$4 sm:$0xff]   ;;  %v2537_v54 = vld [vmem:[%s3424_s3 + $0x1f8] ss:$12 sps:$4 sm:$0xff]   ;;  %v2541_v57 = vld [vmem:[%s3424_s3 + $0x214] ss:$12 sps:$4 sm:$0xff]  }
  0x38   :  { %2401 = vmatmul.mubr.msk.bf16.vlgmr.msra.gmra.mrb[4].mxu0 %vm117_vm1, %v69_v8  ;;  %763 = vmatpush1.bf16.msra.mxu1 %v2525_v29  ;;  %v2540_v55 = vld [vmem:[%s3424_s3 + $0x16c] ss:$12 sps:$4 sm:$0xff]   ;;  %v2538_v56 = vld [vmem:[%s3424_s3 + $0x168] ss:$12 sps:$4 sm:$0xff]   ;;  %v2543_v58 = vld [vmem:[%s3424_s3 + $0x210] ss:$12 sps:$4 sm:$0xff]  }
  0x39   :  { %716 = vmatpush1.bf16.msra.mxu0 %v2475_v14  ;;  %764 = vmatprep.subr.bf16.mxu1 %v2529_v31  ;;  %v2544_v59 = vld [vmem:[%s3424_s3 + $0x22c] ss:$12 sps:$4 sm:$0xff]   ;;  %v2546_v60 = vld [vmem:[%s3424_s3 + $0x228] ss:$12 sps:$4 sm:$0xff]   ;;  %v76_v3 = vld [vmem:[%s3423_s2] sm:$0x7] }
  0x3a   :  { %717 = vmatprep.subr.bf16.mxu0 %v2480_v15  ;;  %v2547_v61 = vld [vmem:[%s3424_s3 + $0xc8] ss:$12 sps:$4 sm:$0xff]   ;;  %v2598_v62 = vld [vmem:[#allocation5 + $0xc8] ss:$12 sps:$4 sm:$0xff]   ;;  %v3086_v4 = vsub.s32 1, %v79_v1  ;;  %v81_v5 = vrot.slane %v76_v3, %v3081_v2  ;;  %v3090_v11 = vsub.s32 2, %v79_v1 }
  0x3b   :  { %v2603_v21 = vld [vmem:[#allocation5 + $0xe0] ss:$12 sps:$4 sm:$0xff]   ;;  %v2608_v29 = vld [vmem:[#allocation5 + $0xf8] ss:$12 sps:$4 sm:$0xff]   ;;  %v2577_v1 = vld [vmem:[#allocation5 + $0x30] ss:$12 sps:$4 sm:$0xff]  }
  0x3c   :  { %765 = vmatpush1.bf16.msra.mxu1 %v2531_v33  ;;  %v85_v6 = vrot.slane %v76_v3, %v3086_v4  ;;  %v89_v17 = vrot.slane %v76_v3, %v3090_v11  ;;  %v2604_v26 = vld [vmem:[#allocation5 + $0x20] ss:$12 sps:$4 sm:$0xff]   ;;  %v2609_v33 = vld [vmem:[#allocation5 + $0x38] ss:$12 sps:$4 sm:$0xff]  }
  0x3d   :  { %718 = vmatpush1.bf16.msra.mxu0 %v2478_v18  ;;  %766 = vmatprep.subr.bf16.mxu1 %v2535_v53  ;;  %v2566_v53 = vld [vmem:[%s3424_s3 + $0x1d0] ss:$12 sps:$4 sm:$0xff]  }
  0x3e   :  { %719 = vmatprep.subr.bf16.mxu0 %v2483_v19  ;;  %v2599_v19 = vld [vmem:[#allocation5 + $0x8] ss:$12 sps:$4 sm:$0xff]   ;;  %v2582_v3 = vld [vmem:[#allocation5 + $0x4c] ss:$12 sps:$4 sm:$0xff]  }
  0x40   :  { %767 = vmatpush1.bf16.msra.mxu1 %v2537_v54  ;;  %v2567_v54 = vld [vmem:[%s3424_s3 + $0x1e8] ss:$12 sps:$4 sm:$0xff]  }
  0x41   :  { %720 = vmatpush1.bf16.msra.mxu0 %v2481_v22  ;;  %768 = vmatprep.subr.bf16.mxu1 %v2541_v57  ;;  %v2570_v57 = vld [vmem:[%s3424_s3 + $0x230] ss:$12 sps:$4 sm:$0xff]  }
  0x42   :  { %721 = vmatprep.subr.bf16.mxu0 %v2486_v24 }
  0x44   :  { %769 = vmatpush1.bf16.msra.mxu1 %v2543_v58  ;;  %v2573_v58 = vld [vmem:[#allocation5 + $0x4] ss:$12 sps:$4 sm:$0xff]  }
  0x45   :  { %722 = vmatpush1.bf16.msra.mxu0 %v2484_v27  ;;  %770 = vmatprep.subr.bf16.mxu1 %v2544_v59  ;;  %v2571_v59 = vld [vmem:[#allocation5] ss:$12 sps:$4 sm:$0xff]  }
  0x46   :  { %723 = vmatprep.subr.bf16.mxu0 %v2489_v28 }
  0x48   :  { %771 = vmatpush1.bf16.msra.mxu1 %v2546_v60  ;;  %v2576_v60 = vld [vmem:[#allocation5 + $0x1c] ss:$12 sps:$4 sm:$0xff]  }
  0x49   :  { %724 = vmatpush1.bf16.msra.mxu0 %v2487_v30  ;;  %2334 = vmatprep.subr.bf16.mxu1 %v2547_v61  ;;  %v2548_v30 = vld [vmem:[%s3424_s3 + $0x8] ss:$12 sps:$4 sm:$0xff]  }
  0x4a   :  { %725 = vmatprep.subr.bf16.mxu0 %v2492_v32  ;;  %v2549_v32 = vld [vmem:[%s3424_s3 + $0xe0] ss:$12 sps:$4 sm:$0xff]   ;;  %v2574_v61 = vld [vmem:[#allocation5 + $0x18] ss:$12 sps:$4 sm:$0xff]  }
  0x4d   :  { %726 = vmatpush1.bf16.msra.mxu0 %v2490_v34  ;;  %v2613_v34 = vld [vmem:[#allocation5 + $0x110] ss:$12 sps:$4 sm:$0xff]  }
  0x4e   :  { %727 = vmatprep.subr.bf16.mxu0 %v2495_v35  ;;  %v2550_v35 = vld [vmem:[%s3424_s3 + $0x20] ss:$12 sps:$4 sm:$0xff]  }
  0x51   :  { %728 = vmatpush1.bf16.msra.mxu0 %v2493_v36  ;;  %v2551_v36 = vld [vmem:[%s3424_s3 + $0xf8] ss:$12 sps:$4 sm:$0xff]  }
  0x52   :  { %729 = vmatprep.subr.bf16.mxu0 %v2498_v37  ;;  %v2614_v37 = vld [vmem:[#allocation5 + $0x50] ss:$12 sps:$4 sm:$0xff]  }
  0x55   :  { %730 = vmatpush1.bf16.msra.mxu0 %v2496_v38  ;;  %v2618_v38 = vld [vmem:[#allocation5 + $0x128] ss:$12 sps:$4 sm:$0xff]  }
  0x56   :  { %731 = vmatprep.subr.bf16.mxu0 %v2501_v39  ;;  %v2552_v39 = vld [vmem:[%s3424_s3 + $0x38] ss:$12 sps:$4 sm:$0xff]  }
  0x59   :  { %732 = vmatpush1.bf16.msra.mxu0 %v2499_v40  ;;  %v2553_v40 = vld [vmem:[%s3424_s3 + $0x110] ss:$12 sps:$4 sm:$0xff]  }
  0x5a   :  { %733 = vmatprep.subr.bf16.mxu0 %v2504_v41  ;;  %v2554_v41 = vld [vmem:[%s3424_s3 + $0x50] ss:$12 sps:$4 sm:$0xff]  }
  0x5d   :  { %734 = vmatpush1.bf16.msra.mxu0 %v2502_v42  ;;  %v2555_v42 = vld [vmem:[%s3424_s3 + $0x128] ss:$12 sps:$4 sm:$0xff]  }
  0x5e   :  { %735 = vmatprep.subr.bf16.mxu0 %v2510_v43  ;;  %v2556_v43 = vld [vmem:[%s3424_s3 + $0x68] ss:$12 sps:$4 sm:$0xff]  }
  0x61   :  { %736 = vmatpush1.bf16.msra.mxu0 %v2508_v44  ;;  %v2557_v44 = vld [vmem:[%s3424_s3 + $0x140] ss:$12 sps:$4 sm:$0xff]  }
  0x62   :  { %737 = vmatprep.subr.bf16.mxu0 %v2516_v45  ;;  %v2558_v45 = vld [vmem:[%s3424_s3 + $0x80] ss:$12 sps:$4 sm:$0xff]  }
  0x65   :  { %738 = vmatpush1.bf16.msra.mxu0 %v2514_v46  ;;  %v2559_v46 = vld [vmem:[%s3424_s3 + $0x158] ss:$12 sps:$4 sm:$0xff]  }
  0x66   :  { %739 = vmatprep.subr.bf16.mxu0 %v2522_v47  ;;  %v2560_v47 = vld [vmem:[%s3424_s3 + $0x98] ss:$12 sps:$4 sm:$0xff]  }
  0x69   :  { %740 = vmatpush1.bf16.msra.mxu0 %v2520_v48  ;;  %v2561_v48 = vld [vmem:[%s3424_s3 + $0x170] ss:$12 sps:$4 sm:$0xff]  }
  0x6a   :  { %741 = vmatprep.subr.bf16.mxu0 %v2528_v49  ;;  %v2562_v49 = vld [vmem:[%s3424_s3 + $0xb0] ss:$12 sps:$4 sm:$0xff]  }
  0x6d   :  { %742 = vmatpush1.bf16.msra.mxu0 %v2526_v50  ;;  %v2563_v50 = vld [vmem:[%s3424_s3 + $0x188] ss:$12 sps:$4 sm:$0xff]  }
  0x6e   :  { %743 = vmatprep.subr.bf16.mxu0 %v2534_v51  ;;  %v2564_v51 = vld [vmem:[%s3424_s3 + $0x1a0] ss:$12 sps:$4 sm:$0xff]  }
  0x71   :  { %744 = vmatpush1.bf16.msra.mxu0 %v2532_v52  ;;  %v2565_v52 = vld [vmem:[%s3424_s3 + $0x1b8] ss:$12 sps:$4 sm:$0xff]  }
  0x72   :  { %745 = vmatprep.subr.bf16.mxu0 %v2540_v55  ;;  %v2568_v55 = vld [vmem:[%s3424_s3 + $0x200] ss:$12 sps:$4 sm:$0xff]  }
  0x75   :  { %746 = vmatpush1.bf16.msra.mxu0 %v2538_v56  ;;  %v2569_v56 = vld [vmem:[%s3424_s3 + $0x218] ss:$12 sps:$4 sm:$0xff]  }
  0x76   :  { %2365 = vmatprep.subr.bf16.mxu0 %v2598_v62  ;;  %v2579_v62 = vld [vmem:[#allocation5 + $0x34] ss:$12 sps:$4 sm:$0xff]  }
 0x103   :  { %v165_v7 = vpop.f32.mrb[0].mxu0 }
 0x104   :  { %v166_v8 = vadd.f32 %v165_v7, %v81_v5  ;;  %v167_v9 = vpop.f32.mrb[1].mxu0  ;;  %v2580_v5 = vld [vmem:[#allocation5 + $0x48] ss:$12 sps:$4 sm:$0xff]  }
 0x105   :  { %v168_v12 = vadd.f32 %v167_v9, %v85_v6  ;;  %v169_v13 = vpop.f32.mrb[2].mxu0  ;;  %v2585_v6 = vld [vmem:[#allocation5 + $0x64] ss:$12 sps:$4 sm:$0xff]   ;;  %v2619_v7 = vld [vmem:[#allocation5 + $0x68] ss:$12 sps:$4 sm:$0xff]  }
 0x106   :  { %v212_v14 = vmax.f32 %v166_v8, 0.0  ;;  %v170_v15 = vpop.f32.mrb[3].mxu0  ;;  %v2583_v8 = vld [vmem:[#allocation5 + $0x60] ss:$12 sps:$4 sm:$0xff]   ;;  %v2588_v9 = vld [vmem:[#allocation5 + $0x7c] ss:$12 sps:$4 sm:$0xff]  }
 0x107   :  { %v213_v16 = vmax.f32 %v168_v12, 0.0  ;;  %v2623_v12 = vld [vmem:[#allocation5 + $0x140] ss:$12 sps:$4 sm:$0xff]  }
 0x108   :  { %v215_v20 = vpack.c.bf16 %v212_v14, %v212_v14  ;;  %v2624_v13 = vld [vmem:[#allocation5 + $0x80] ss:$12 sps:$4 sm:$0xff]   ;;  %v2586_v14 = vld [vmem:[#allocation5 + $0x78] ss:$12 sps:$4 sm:$0xff]  }
 0x109   :  { %v216_v18 = vpack.c.bf16 %v213_v16, %v213_v16  ;;  %v2591_v15 = vld [vmem:[#allocation5 + $0x94] ss:$12 sps:$4 sm:$0xff]   ;;  %v2628_v16 = vld [vmem:[#allocation5 + $0x158] ss:$12 sps:$4 sm:$0xff]  }
 0x10b   :  { %v206_v22 = vpop.f32.mrb[4].mxu0  ;;  %747 = vmatprep.mubr.bf16.mxu0 %v216_v18 }
 0x10c   :  { %v207_v23 = vadd.f32 %v206_v22, %v89_v17  ;;  %v2402_v24 = vpop.f32.mrb[5].mxu0  ;;  %748 = vmatmul.mubr.bf16.vlgmr.msra.gmra.mrb[8].mxu0 %v215_v20  ;;  %v2629_v17 = vld [vmem:[#allocation5 + $0x98] ss:$12 sps:$4 sm:$0xff]   ;;  %v2592_v22 = vld [vmem:[#allocation5 + $0xa8] ss:$12 sps:$4 sm:$0xff]  }
 0x10d   :  { %v209_v25 = vpop.f32.mrb[6].mxu0  ;;  %2366 = vmatpush3.bf16.msra.mxu0 %v2599_v19  ;;  %v2594_v19 = vld [vmem:[#allocation5 + $0xac] ss:$12 sps:$4 sm:$0xff]  }
 0x10e   :  { %v214_v27 = vmax.f32 %v207_v23, 0.0  ;;  %v2403_v28 = vpop.f32.mrb[7].mxu0  ;;  %2367 = vmatprep.subr.bf16.mxu0 %v2603_v21  ;;  %v2634_v21 = vld [vmem:[#allocation5 + $0xb0] ss:$12 sps:$4 sm:$0xff]   ;;  %v2595_v24 = vld [vmem:[#allocation5 + $0xc0] ss:$12 sps:$4 sm:$0xff]  }
 0x10f   :  { %v2597_v23 = vld [vmem:[#allocation5 + $0xc4] ss:$12 sps:$4 sm:$0xff]   ;;  %v2602_v25 = vld [vmem:[#allocation5 + $0xdc] ss:$12 sps:$4 sm:$0xff]  }
 0x110   :  { %v3096_v31 = vpack.c.bf16 %v214_v27, %v214_v27  ;;  %v2607_v27 = vld [vmem:[#allocation5 + $0xf4] ss:$12 sps:$4 sm:$0xff]   ;;  %v2605_v28 = vld [vmem:[#allocation5 + $0xf0] ss:$12 sps:$4 sm:$0xff]  }
 0x111   :  { %2368 = vmatpush3.bf16.msra.mxu0 %v2604_v26  ;;  %v2600_v26 = vld [vmem:[#allocation5 + $0xd8] ss:$12 sps:$4 sm:$0xff]  }
 0x112   :  { %789 = vmatmul.mubr.bf16.vlgmr.msra.gmra.mrb[0].mxu1 %v3096_v31  ;;  %2369 = vmatprep.subr.bf16.mxu0 %v2608_v29  ;;  %v2612_v29 = vld [vmem:[#allocation5 + $0x10c] ss:$12 sps:$4 sm:$0xff]  }
 0x113   :  { %2335 = vmatpush3.bf16.msra.mxu1 %v2548_v30  ;;  %829 = vmatprep.mubr.bf16.mxu1 %v216_v18  ;;  %v2589_v18 = vld [vmem:[#allocation5 + $0x90] ss:$12 sps:$4 sm:$0xff]   ;;  %v2610_v30 = vld [vmem:[#allocation5 + $0x108] ss:$12 sps:$4 sm:$0xff]  }
 0x114   :  { %2336 = vmatprep.subr.bf16.mxu1 %v2549_v32  ;;  %v2615_v32 = vld [vmem:[#allocation5 + $0x120] ss:$12 sps:$4 sm:$0xff]  }
 0x115   :  { %2370 = vmatpush3.bf16.msra.mxu0 %v2609_v33  ;;  %v2622_v33 = vld [vmem:[#allocation5 + $0x13c] ss:$12 sps:$4 sm:$0xff]  }
 0x116   :  { %2371 = vmatprep.subr.bf16.mxu0 %v2613_v34  ;;  %v2620_v34 = vld [vmem:[#allocation5 + $0x138] ss:$12 sps:$4 sm:$0xff]  }
 0x117   :  { %2337 = vmatpush3.bf16.msra.mxu1 %v2550_v35  ;;  %v2627_v35 = vld [vmem:[#allocation5 + $0x154] ss:$12 sps:$4 sm:$0xff]  }
 0x118   :  { %2338 = vmatprep.subr.bf16.mxu1 %v2551_v36  ;;  %v2625_v36 = vld [vmem:[#allocation5 + $0x150] ss:$12 sps:$4 sm:$0xff]  }
 0x119   :  { %2372 = vmatpush3.bf16.msra.mxu0 %v2614_v37  ;;  %v2632_v37 = vld [vmem:[#allocation5 + $0x16c] ss:$12 sps:$4 sm:$0xff]  }
 0x11a   :  { %2373 = vmatprep.subr.bf16.mxu0 %v2618_v38  ;;  %v2630_v38 = vld [vmem:[#allocation5 + $0x168] ss:$12 sps:$4 sm:$0xff]  }
 0x11b   :  { %2339 = vmatpush3.bf16.msra.mxu1 %v2552_v39  ;;  %v2637_v39 = vld [vmem:[#allocation5 + $0x184] ss:$12 sps:$4 sm:$0xff]  }
 0x11c   :  { %2340 = vmatprep.subr.bf16.mxu1 %v2553_v40  ;;  %v3180_v40 = vld [vmem:[%s3425_s4] sm:$0x7] }
 0x11d   :  { %2374 = vmatpush3.bf16.msra.mxu0 %v2619_v7  ;;  %v2649_v7 = vld [vmem:[#allocation5 + $0x1cc] ss:$12 sps:$4 sm:$0xff]  }
 0x11e   :  { %2375 = vmatprep.subr.bf16.mxu0 %v2623_v12  ;;  %v2653_v12 = vld [vmem:[#allocation5 + $0x1e4] ss:$12 sps:$4 sm:$0xff]  }
 0x11f   :  { %2341 = vmatpush3.bf16.msra.mxu1 %v2554_v41 }
 0x120   :  { %2342 = vmatprep.subr.bf16.mxu1 %v2555_v42  ;;  %v319_v42 = vrot.slane %v3180_v40, %v3081_v2 }
 0x121   :  { %2376 = vmatpush3.bf16.msra.mxu0 %v2624_v13  ;;  %v2651_v13 = vld [vmem:[#allocation5 + $0x1e0] ss:$12 sps:$4 sm:$0xff]  }
 0x122   :  { %2377 = vmatprep.subr.bf16.mxu0 %v2628_v16  ;;  %v2655_v16 = vld [vmem:[#allocation5 + $0x1f8] ss:$12 sps:$4 sm:$0xff]  }
 0x123   :  { %2343 = vmatpush3.bf16.msra.mxu1 %v2556_v43 }
 0x124   :  { %2344 = vmatprep.subr.bf16.mxu1 %v2557_v44  ;;  %v323_v44 = vrot.slane %v3180_v40, %v3086_v4 }
 0x125   :  { %2378 = vmatpush3.bf16.msra.mxu0 %v2629_v17  ;;  %v2658_v17 = vld [vmem:[#allocation5 + $0x200] ss:$12 sps:$4 sm:$0xff]  }
 0x127   :  { %2345 = vmatpush3.bf16.msra.mxu1 %v2558_v45 }
 0x128   :  { %2346 = vmatprep.subr.bf16.mxu1 %v2559_v46 }
 0x12b   :  { %2347 = vmatpush3.bf16.msra.mxu1 %v2560_v47 }
 0x12c   :  { %2348 = vmatprep.subr.bf16.mxu1 %v2561_v48 }
 0x12f   :  { %2349 = vmatpush3.bf16.msra.mxu1 %v2562_v49 }
 0x130   :  { %2404 = vmatprep.subr.bf16.mxu1 %v2832_v10 }
 0x132   :  { %830 = vmatmul.mubr.bf16.vlgmr.msra.gmra.mrb[4].mxu1 %v215_v20  ;;  %v2633_v20 = vld [vmem:[#allocation5 + $0x170] ss:$12 sps:$4 sm:$0xff]  }
 0x133   :  { %2405 = vmatpush3.bf16.msra.mxu1 %v2563_v50  ;;  %2420 = vmatprep.mubr.msk.bf16.mxu1 %vm2833_vm2, %v2832_v10 }
 0x134   :  { %2406 = vmatprep.subr.bf16.mxu1 %v2832_v10  ;;  %2379 = vmatprep.subr.bf16.mxu0 %v2633_v20  ;;  %v2662_v20 = vld [vmem:[#allocation5 + $0x218] ss:$12 sps:$4 sm:$0xff]  }
 0x135   :  { %2380 = vmatpush3.bf16.msra.mxu0 %v2634_v21  ;;  %v2665_v21 = vld [vmem:[#allocation5 + $0x22c] ss:$12 sps:$4 sm:$0xff]  }
 0x136   :  { %2424 = vmatprep.subr.bf16.mxu0 %v2832_v10 }
 0x137   :  { %2407 = vmatpush3.bf16.msra.mxu1 %v2564_v51 }
 0x138   :  { %2408 = vmatprep.subr.bf16.mxu1 %v2832_v10 }
 0x13b   :  { %2409 = vmatpush3.bf16.msra.mxu1 %v2565_v52 }
 0x13c   :  { %2410 = vmatprep.subr.bf16.mxu1 %v2832_v10 }
 0x13f   :  { %2411 = vmatpush3.bf16.msra.mxu1 %v2566_v53 }
 0x140   :  { %2412 = vmatprep.subr.bf16.mxu1 %v2832_v10 }
 0x143   :  { %2413 = vmatpush3.bf16.msra.mxu1 %v2567_v54 }
 0x144   :  { %2414 = vmatprep.subr.bf16.mxu1 %v2832_v10 }
 0x147   :  { %2415 = vmatpush3.bf16.msra.mxu1 %v2568_v55 }
 0x148   :  { %2416 = vmatprep.subr.bf16.mxu1 %v2832_v10 }
 0x14b   :  { %2417 = vmatpush3.bf16.msra.mxu1 %v2569_v56 }
 0x14c   :  { %2418 = vmatprep.subr.bf16.mxu1 %v2832_v10 }
 0x14f   :  { %2419 = vmatpush3.bf16.msra.mxu1 %v2570_v57 }
 0x150   :  { %1380 = vmatprep.subr.bf16.mxu1 %v2573_v58  ;;  %v2635_v58 = vld [vmem:[#allocation5 + $0x180] ss:$12 sps:$4 sm:$0xff]  }
 0x152   :  { %2421 = vmatmul.mubr.bf16.vlgmr.msra.gmra.mrb[8].mxu1 %v3096_v31  ;;  %v2617_v31 = vld [vmem:[#allocation5 + $0x124] ss:$12 sps:$4 sm:$0xff]  }
 0x153   :  { %1381 = vmatpush1.bf16.msra.mxu1 %v2571_v59  ;;  %v2638_v59 = vld [vmem:[#allocation5 + $0x188] ss:$12 sps:$4 sm:$0xff]  }
 0x154   :  { %1382 = vmatprep.subr.bf16.mxu1 %v2576_v60 }
 0x157   :  { %1383 = vmatpush1.bf16.msra.mxu1 %v2574_v61  ;;  %v2641_v61 = vld [vmem:[#allocation5 + $0x19c] ss:$12 sps:$4 sm:$0xff]  }
 0x158   :  { %1384 = vmatprep.subr.bf16.mxu1 %v2579_v62  ;;  %v2639_v62 = vld [vmem:[#allocation5 + $0x198] ss:$12 sps:$4 sm:$0xff]  }
 0x15b   :  { %1385 = vmatpush1.bf16.msra.mxu1 %v2577_v1  ;;  %v2642_v1 = vld [vmem:[#allocation5 + $0x1a0] ss:$12 sps:$4 sm:$0xff]  }
 0x15c   :  { %1386 = vmatprep.subr.bf16.mxu1 %v2582_v3  ;;  %v2645_v3 = vld [vmem:[#allocation5 + $0x1b4] ss:$12 sps:$4 sm:$0xff]  }
 0x15f   :  { %1387 = vmatpush1.bf16.msra.mxu1 %v2580_v5  ;;  %v2643_v5 = vld [vmem:[#allocation5 + $0x1b0] ss:$12 sps:$4 sm:$0xff]  }
 0x160   :  { %1388 = vmatprep.subr.bf16.mxu1 %v2585_v6  ;;  %v2646_v6 = vld [vmem:[#allocation5 + $0x1b8] ss:$12 sps:$4 sm:$0xff]  }
 0x163   :  { %1389 = vmatpush1.bf16.msra.mxu1 %v2583_v8  ;;  %v2647_v8 = vld [vmem:[#allocation5 + $0x1c8] ss:$12 sps:$4 sm:$0xff]  }
 0x164   :  { %1390 = vmatprep.subr.bf16.mxu1 %v2588_v9  ;;  %v2650_v9 = vld [vmem:[#allocation5 + $0x1d0] ss:$12 sps:$4 sm:$0xff]  }
 0x167   :  { %1391 = vmatpush1.bf16.msra.mxu1 %v2586_v14  ;;  %v2654_v14 = vld [vmem:[#allocation5 + $0x1e8] ss:$12 sps:$4 sm:$0xff]  }
 0x168   :  { %1392 = vmatprep.subr.bf16.mxu1 %v2591_v15  ;;  %v2657_v15 = vld [vmem:[#allocation5 + $0x1fc] ss:$12 sps:$4 sm:$0xff]  }
 0x16b   :  { %1393 = vmatpush1.bf16.msra.mxu1 %v2589_v18  ;;  %v2661_v18 = vld [vmem:[#allocation5 + $0x214] ss:$12 sps:$4 sm:$0xff]  }
 0x16c   :  { %1394 = vmatprep.subr.bf16.mxu1 %v2594_v19  ;;  %v2659_v19 = vld [vmem:[#allocation5 + $0x210] ss:$12 sps:$4 sm:$0xff]  }
 0x16f   :  { %1395 = vmatpush1.bf16.msra.mxu1 %v2592_v22 }
 0x170   :  { %1396 = vmatprep.subr.bf16.mxu1 %v2597_v23 }
 0x173   :  { %1397 = vmatpush1.bf16.msra.mxu1 %v2595_v24 }
 0x174   :  { %1398 = vmatprep.subr.bf16.mxu1 %v2602_v25 }
 0x177   :  { %1399 = vmatpush1.bf16.msra.mxu1 %v2600_v26  ;;  %v2663_v26 = vld [vmem:[#allocation5 + $0x228] ss:$12 sps:$4 sm:$0xff]  }
 0x178   :  { %1400 = vmatprep.subr.bf16.mxu1 %v2607_v27  ;;  %v2666_v27 = vld [vmem:[#allocation5 + $0x230] ss:$12 sps:$4 sm:$0xff]  }
 0x17b   :  { %1401 = vmatpush1.bf16.msra.mxu1 %v2605_v28 }
 0x17c   :  { %1402 = vmatprep.subr.bf16.mxu1 %v2612_v29  ;;  %v327_v29 = vrot.slane %v3180_v40, %v3090_v11  ;;  %v2670_v40 = vld [vmem:[%s3428_s7 + $0x10] ss:$8 sps:$4 sm:$0xff]  }
 0x17f   :  { %1403 = vmatpush1.bf16.msra.mxu1 %v2610_v30 }
 0x180   :  { %1404 = vmatprep.subr.bf16.mxu1 %v2617_v31 }
 0x183   :  { %1405 = vmatpush1.bf16.msra.mxu1 %v2615_v32 }
 0x184   :  { %1406 = vmatprep.subr.bf16.mxu1 %v2622_v33 }
 0x187   :  { %1407 = vmatpush1.bf16.msra.mxu1 %v2620_v34 }
 0x188   :  { %1408 = vmatprep.subr.bf16.mxu1 %v2627_v35 }
 0x18b   :  { %1409 = vmatpush1.bf16.msra.mxu1 %v2625_v36 }
 0x18c   :  { %1410 = vmatprep.subr.bf16.mxu1 %v2632_v37 }
 0x18f   :  { %1411 = vmatpush1.bf16.msra.mxu1 %v2630_v38  ;;  %v2669_v38 = vld [vmem:[%s3428_s7 + $0x4] ss:$8 sps:$4 sm:$0xff]  }
 0x190   :  { %1421 = vmatprep.subr.bf16.mxu1 %v2637_v39  ;;  %v2672_v39 = vld [vmem:[%s3428_s7 + $0x14] ss:$8 sps:$4 sm:$0xff]  }
 0x1df   :  { %v749_v41 = vpop.f32.mrb[8].mxu0 }
 0x1e0   :  { %v751_v43 = vpop.f32.mrb[9].mxu0  ;;  %v750_v47 = vadd.f32 %v749_v41, %v319_v42  ;;  %v2675_v41 = vld [vmem:[%s3428_s7 + $0x24] ss:$8 sps:$4 sm:$0xff]   ;;  %v2673_v42 = vld [vmem:[%s3428_s7 + $0x20] ss:$8 sps:$4 sm:$0xff]  }
 0x1e1   :  { %v753_v45 = vpop.f32.mrb[10].mxu0  ;;  %v752_v48 = vadd.f32 %v751_v43, %v323_v44  ;;  %v2678_v43 = vld [vmem:[%s3428_s7 + $0x34] ss:$8 sps:$4 sm:$0xff]   ;;  %v2676_v44 = vld [vmem:[%s3428_s7 + $0x30] ss:$8 sps:$4 sm:$0xff]  }
 0x1e2   :  { %v754_v46 = vpop.f32.mrb[11].mxu0  ;;  %v2681_v45 = vld [vmem:[%s3428_s7 + $0x44] ss:$8 sps:$4 sm:$0xff]  }
 0x1e3   :  { %v2679_v46 = vld [vmem:[%s3428_s7 + $0x40] ss:$8 sps:$4 sm:$0xff]  }
 0x1e5   :  { %v790_v49 = vpop.f32.mrb[0].mxu1 }
 0x1e6   :  { %v791_v50 = vadd.f32 %v790_v49, %v750_v47  ;;  %v792_v51 = vpop.f32.mrb[1].mxu1  ;;  %v2684_v47 = vld [vmem:[%s3428_s7 + $0x54] ss:$8 sps:$4 sm:$0xff]   ;;  %v2687_v49 = vld [vmem:[%s3428_s7 + $0x64] ss:$8 sps:$4 sm:$0xff]  }
 0x1e7   :  { %v793_v52 = vadd.f32 %v792_v51, %v752_v48  ;;  %v794_v53 = vpop.f32.mrb[2].mxu1  ;;  %v2682_v48 = vld [vmem:[%s3428_s7 + $0x50] ss:$8 sps:$4 sm:$0xff]   ;;  %v2690_v51 = vld [vmem:[%s3428_s7 + $0x74] ss:$8 sps:$4 sm:$0xff]  }
 0x1e8   :  { %v877_v54 = vmax.f32 %v791_v50, 0.0  ;;  %v795_v55 = vpop.f32.mrb[3].mxu1  ;;  %v2685_v50 = vld [vmem:[%s3428_s7 + $0x60] ss:$8 sps:$4 sm:$0xff]   ;;  %v2693_v53 = vld [vmem:[%s3428_s7 + $0x84] ss:$8 sps:$4 sm:$0xff]  }
 0x1e9   :  { %v878_v56 = vmax.f32 %v793_v52, 0.0  ;;  %v2688_v52 = vld [vmem:[%s3428_s7 + $0x70] ss:$8 sps:$4 sm:$0xff]   ;;  %v2696_v55 = vld [vmem:[%s3428_s7 + $0x94] ss:$8 sps:$4 sm:$0xff]  }
 0x1ea   :  { %v880_v60 = vpack.c.bf16 %v877_v54, %v877_v54  ;;  %v2691_v54 = vld [vmem:[%s3428_s7 + $0x80] ss:$8 sps:$4 sm:$0xff]  }
 0x1eb   :  { %v881_v57 = vpack.c.bf16 %v878_v56, %v878_v56  ;;  %v2694_v56 = vld [vmem:[%s3428_s7 + $0x90] ss:$8 sps:$4 sm:$0xff]  }
 0x1ed   :  { %1412 = vmatprep.mubr.bf16.mxu1 %v881_v57  ;;  %1494 = vmatprep.mubr.bf16.mxu0 %v881_v57  ;;  %v2699_v57 = vld [vmem:[%s3428_s7 + $0xa4] ss:$8 sps:$4 sm:$0xff]  }
 0x1ee   :  { %1413 = vmatmul.mubr.bf16.vlgmr.msra.gmra.mrb[12].mxu1 %v880_v60  ;;  %1495 = vmatmul.mubr.bf16.vlgmr.msra.gmra.mrb[12].mxu0 %v880_v60  ;;  %v2700_v60 = vld [vmem:[%s3428_s7 + $0xb0] ss:$8 sps:$4 sm:$0xff]  }
 0x1ef   :  { %1422 = vmatpush1.bf16.msra.mxu1 %v2635_v58  ;;  %2425 = vmatpush3.bf16.msra.mxu0 %v2638_v59  ;;  %v2697_v58 = vld [vmem:[%s3428_s7 + $0xa0] ss:$8 sps:$4 sm:$0xff]   ;;  %v2702_v59 = vld [vmem:[%s3428_s7 + $0xb4] ss:$8 sps:$4 sm:$0xff]  }
 0x1f0   :  { %1423 = vmatprep.subr.bf16.mxu1 %v2641_v61  ;;  %2426 = vmatprep.subr.bf16.mxu0 %v2832_v10  ;;  %v2705_v61 = vld [vmem:[%s3428_s7 + $0xc4] ss:$8 sps:$4 sm:$0xff]  }
 0x1f1   :  { %1453 = vmatprep.mubr.bf16.mxu1 %v2831_v0  ;;  %2440 = vmatprep.mubr.msk.bf16.mxu0 %vm2833_vm2, %v2832_v10 }
 0x1f3   :  { %1424 = vmatpush1.bf16.msra.mxu1 %v2639_v62  ;;  %2427 = vmatpush3.bf16.msra.mxu0 %v2642_v1  ;;  %v2703_v62 = vld [vmem:[%s3428_s7 + $0xc0] ss:$8 sps:$4 sm:$0xff]   ;;  %v2708_v1 = vld [vmem:[%s3428_s7 + $0xd4] ss:$8 sps:$4 sm:$0xff]  }
 0x1f4   :  { %1425 = vmatprep.subr.bf16.mxu1 %v2645_v3  ;;  %2428 = vmatprep.subr.bf16.mxu0 %v2832_v10  ;;  %v2706_v3 = vld [vmem:[%s3428_s7 + $0xd0] ss:$8 sps:$4 sm:$0xff]  }
 0x1f7   :  { %1426 = vmatpush1.bf16.msra.mxu1 %v2643_v5  ;;  %2429 = vmatpush3.bf16.msra.mxu0 %v2646_v6  ;;  %v2711_v5 = vld [vmem:[%s3428_s7 + $0xe4] ss:$8 sps:$4 sm:$0xff]   ;;  %v2709_v6 = vld [vmem:[%s3428_s7 + $0xe0] ss:$8 sps:$4 sm:$0xff]  }
 0x1f8   :  { %1427 = vmatprep.subr.bf16.mxu1 %v2649_v7  ;;  %2430 = vmatprep.subr.bf16.mxu0 %v2832_v10  ;;  %v2714_v7 = vld [vmem:[%s3428_s7 + $0xf4] ss:$8 sps:$4 sm:$0xff]  }
 0x1fb   :  { %1428 = vmatpush1.bf16.msra.mxu1 %v2647_v8  ;;  %2431 = vmatpush3.bf16.msra.mxu0 %v2650_v9  ;;  %v2712_v8 = vld [vmem:[%s3428_s7 + $0xf0] ss:$8 sps:$4 sm:$0xff]   ;;  %v2717_v9 = vld [vmem:[%s3428_s7 + $0x104] ss:$8 sps:$4 sm:$0xff]  }
 0x1fc   :  { %1429 = vmatprep.subr.bf16.mxu1 %v2653_v12  ;;  %2432 = vmatprep.subr.bf16.mxu0 %v2832_v10  ;;  %v2739_v12 = vld [vmem:[%s3430_s9] sm:$0xff]  }
 0x1ff   :  { %1430 = vmatpush1.bf16.msra.mxu1 %v2651_v13  ;;  %2433 = vmatpush3.bf16.msra.mxu0 %v2654_v14  ;;  %v2740_v13 = vld [vmem:[%s3430_s9 + $0x8] sm:$0xff]   ;;  %v2741_v14 = vld [vmem:[%s3430_s9 + $0x10] sm:$0xff]  }
 0x200   :  { %1431 = vmatprep.subr.bf16.mxu1 %v2657_v15  ;;  %2434 = vmatprep.subr.bf16.mxu0 %v2832_v10  ;;  %v2742_v15 = vld [vmem:[%s3430_s9 + $0x18] sm:$0xff]  }
 0x203   :  { %1432 = vmatpush1.bf16.msra.mxu1 %v2655_v16  ;;  %2435 = vmatpush3.bf16.msra.mxu0 %v2658_v17  ;;  %v2743_v16 = vld [vmem:[%s3430_s9 + $0x20] sm:$0xff]   ;;  %v2744_v17 = vld [vmem:[%s3430_s9 + $0x28] sm:$0xff]  }
 0x204   :  { %1433 = vmatprep.subr.bf16.mxu1 %v2661_v18  ;;  %2436 = vmatprep.subr.bf16.mxu0 %v2832_v10  ;;  %v2745_v18 = vld [vmem:[%s3430_s9 + $0x30] sm:$0xff]  }
 0x205   :  { %v2350_v22 = vpop.f32.mrb[4].mxu1 }
 0x206   :  { %v2351_v23 = vpop.f32.mrb[5].mxu1 }
 0x207   :  { %v2352_v24 = vadd.f32 %v2351_v23, %v2350_v22  ;;  %v2353_v25 = vpop.f32.mrb[6].mxu1  ;;  %1434 = vmatpush1.bf16.msra.mxu1 %v2659_v19  ;;  %2437 = vmatpush3.bf16.msra.mxu0 %v2662_v20 }
 0x208   :  { %v2354_v28 = vpop.f32.mrb[7].mxu1  ;;  %1435 = vmatprep.subr.bf16.mxu1 %v2665_v21  ;;  %2438 = vmatprep.subr.bf16.mxu0 %v2832_v10  ;;  %v2667_v10 = vld [vmem:[%s3428_s7] ss:$8 sps:$4 sm:$0xff]   ;;  %v2746_v21 = vld [vmem:[%s3430_s9 + $0x38] sm:$0xff]  }
 0x209   :  { %v832_v30 = vadd.f32 %v2352_v24, %v327_v29  ;;  %v2747_v25 = vld [vmem:[%s3430_s9 + $0x40] sm:$0xff]  }
 0x20b   :  { %1436 = vmatpush1.bf16.msra.mxu1 %v2663_v26  ;;  %2439 = vmatpush3.bf16.msra.mxu0 %v2666_v27  ;;  %v2748_v26 = vld [vmem:[%s3430_s9 + $0x48] sm:$0xff]   ;;  %v979_v27 = vld [vmem:[%s3427_s6] sm:$0x7] }
 0x20c   :  { %2041 = vmatprep.subr.bf16.mxu1 %v2831_v0  ;;  %1848 = vmatprep.subr.bf16.mxu0 %v2669_v38  ;;  %v992_v28 = vrot.slane %v979_v27, %v3090_v11  ;;  %v984_v29 = vrot.slane %v979_v27, %v3081_v2  ;;  %v2715_v11 = vld [vmem:[%s3428_s7 + $0x100] ss:$8 sps:$4 sm:$0xff]  }
 0x225   :  { %v871_v31 = vpop.f32.mrb[8].mxu1 }
 0x226   :  { %v872_v32 = vadd.f32 %v871_v31, %v832_v30  ;;  %v2422_v33 = vpop.f32.mrb[9].mxu1  ;;  %v988_v30 = vrot.slane %v979_v27, %v3086_v4 }
 0x227   :  { %v874_v34 = vpop.f32.mrb[10].mxu1 }
 0x228   :  { %v879_v35 = vmax.f32 %v872_v32, 0.0  ;;  %v2423_v36 = vpop.f32.mrb[11].mxu1 }
 0x22a   :  { %v882_v37 = vpack.c.bf16 %v879_v35, %v879_v35 }
 0x22c   :  { %1454 = vmatmul.mubr.bf16.vlgmr.msra.gmra.mrb[12].mxu1 %v882_v37  ;;  %2441 = vmatmul.mubr.bf16.vlgmr.msra.gmra.mrb[16].mxu0 %v882_v37 }
 0x22d   :  { %1849 = vmatpush1.bf16.msra.mxu0 %v2667_v10  ;;  %2042 = vmatpush1.bf16.msra.mxu1 %v2739_v12 }
 0x22e   :  { %1850 = vmatprep.subr.bf16.mxu0 %v2672_v39  ;;  %2043 = vmatprep.subr.bf16.mxu1 %v2831_v0 }
 0x231   :  { %1851 = vmatpush1.bf16.msra.mxu0 %v2670_v40  ;;  %2044 = vmatpush1.bf16.msra.mxu1 %v2740_v13 }
 0x232   :  { %1852 = vmatprep.subr.bf16.mxu0 %v2675_v41  ;;  %2045 = vmatprep.subr.bf16.mxu1 %v2831_v0 }
 0x235   :  { %1853 = vmatpush1.bf16.msra.mxu0 %v2673_v42  ;;  %2046 = vmatpush1.bf16.msra.mxu1 %v2741_v14 }
 0x236   :  { %1854 = vmatprep.subr.bf16.mxu0 %v2678_v43  ;;  %2047 = vmatprep.subr.bf16.mxu1 %v2831_v0 }
 0x239   :  { %1855 = vmatpush1.bf16.msra.mxu0 %v2676_v44  ;;  %2048 = vmatpush1.bf16.msra.mxu1 %v2742_v15 }
 0x23a   :  { %1856 = vmatprep.subr.bf16.mxu0 %v2681_v45  ;;  %2049 = vmatprep.subr.bf16.mxu1 %v2831_v0 }
 0x23d   :  { %1857 = vmatpush1.bf16.msra.mxu0 %v2679_v46  ;;  %2050 = vmatpush1.bf16.msra.mxu1 %v2743_v16  ;;  %v2720_v46 = vld [vmem:[%s3428_s7 + $0x114] ss:$8 sps:$4 sm:$0xff]  }
 0x23e   :  { %1858 = vmatprep.subr.bf16.mxu0 %v2684_v47  ;;  %2051 = vmatprep.subr.bf16.mxu1 %v2831_v0  ;;  %v2718_v47 = vld [vmem:[%s3428_s7 + $0x110] ss:$8 sps:$4 sm:$0xff]  }
 0x241   :  { %1859 = vmatpush1.bf16.msra.mxu0 %v2682_v48  ;;  %2052 = vmatpush1.bf16.msra.mxu1 %v2744_v17  ;;  %v2723_v48 = vld [vmem:[%s3428_s7 + $0x124] ss:$8 sps:$4 sm:$0xff]  }
 0x242   :  { %1860 = vmatprep.subr.bf16.mxu0 %v2687_v49  ;;  %2053 = vmatprep.subr.bf16.mxu1 %v2831_v0  ;;  %v2721_v49 = vld [vmem:[%s3428_s7 + $0x120] ss:$8 sps:$4 sm:$0xff]  }
 0x245   :  { %1861 = vmatpush1.bf16.msra.mxu0 %v2685_v50  ;;  %2054 = vmatpush1.bf16.msra.mxu1 %v2745_v18  ;;  %v2726_v50 = vld [vmem:[%s3428_s7 + $0x134] ss:$8 sps:$4 sm:$0xff]   ;;  %v2082_v18 = vand.u32 127, %v78_v63 }
 0x246   :  { %1862 = vmatprep.subr.bf16.mxu0 %v2690_v51  ;;  %2055 = vmatprep.subr.bf16.mxu1 %v2831_v0  ;;  %v2724_v51 = vld [vmem:[%s3428_s7 + $0x130] ss:$8 sps:$4 sm:$0xff]  }
 0x247   :  { %vm2083_vm4 = vcmp.lt.s32.totalorder %v2082_v18, 24  ;;  %vm2096_vm5 = vcmp.eq.s32.totalorder %v2082_v18, 24 }
 0x249   :  { %1863 = vmatpush1.bf16.msra.mxu0 %v2688_v52  ;;  %2056 = vmatpush1.bf16.msra.mxu1 %v2746_v21  ;;  %v2729_v52 = vld [vmem:[%s3428_s7 + $0x144] ss:$8 sps:$4 sm:$0xff]  }
 0x24a   :  { %1864 = vmatprep.subr.bf16.mxu0 %v2693_v53  ;;  %2057 = vmatprep.subr.bf16.mxu1 %v2831_v0  ;;  %v2727_v53 = vld [vmem:[%s3428_s7 + $0x140] ss:$8 sps:$4 sm:$0xff]  }
 0x24d   :  { %1865 = vmatpush1.bf16.msra.mxu0 %v2691_v54  ;;  %2058 = vmatpush1.bf16.msra.mxu1 %v2747_v25  ;;  %v2732_v54 = vld [vmem:[%s3428_s7 + $0x154] ss:$8 sps:$4 sm:$0xff]  }
 0x24e   :  { %1866 = vmatprep.subr.bf16.mxu0 %v2696_v55  ;;  %2059 = vmatprep.subr.bf16.mxu1 %v2831_v0  ;;  %v2730_v55 = vld [vmem:[%s3428_s7 + $0x150] ss:$8 sps:$4 sm:$0xff]  }
 0x251   :  { %1867 = vmatpush1.bf16.msra.mxu0 %v2694_v56  ;;  %2060 = vmatpush1.bf16.msra.mxu1 %v2748_v26  ;;  %v2735_v56 = vld [vmem:[%s3428_s7 + $0x164] ss:$8 sps:$4 sm:$0xff]  }
 0x252   :  { %1868 = vmatprep.subr.bf16.mxu0 %v2699_v57  ;;  %2061 = vmatprep.subr.bf16.mxu1 %v2831_v0  ;;  %v2733_v57 = vld [vmem:[%s3428_s7 + $0x160] ss:$8 sps:$4 sm:$0xff]  }
 0x255   :  { %1869 = vmatpush1.bf16.msra.mxu0 %v2697_v58  ;;  %v2738_v58 = vld [vmem:[%s3428_s7 + $0x174] ss:$8 sps:$4 sm:$0xff]  }
 0x256   :  { %1870 = vmatprep.subr.bf16.mxu0 %v2702_v59  ;;  %v2736_v59 = vld [vmem:[%s3428_s7 + $0x170] ss:$8 sps:$4 sm:$0xff]  }
 0x259   :  { %1871 = vmatpush1.bf16.msra.mxu0 %v2700_v60 }
 0x25a   :  { %1872 = vmatprep.subr.bf16.mxu0 %v2705_v61 }
 0x25d   :  { %1873 = vmatpush1.bf16.msra.mxu0 %v2703_v62  ;;  %v2749_v62 = vld [vmem:[%s3430_s9 + $0x50] sm:$0xff]  }
 0x25e   :  { %1874 = vmatprep.subr.bf16.mxu0 %v2708_v1  ;;  %2062 = vmatpush1.bf16.msra.mxu1 %v2749_v62  ;;  %v2750_v1 = vld [vmem:[%s3430_s9 + $0x58] sm:$0xff]   ;;  %s2834_s9 = smov [#allocation7]  }
 0x25f   :  { %2063 = vmatprep.subr.bf16.mxu1 %v2831_v0 }
 0x261   :  { %1875 = vmatpush1.bf16.msra.mxu0 %v2706_v3  ;;  %v1596_v3 = vld [vmem:[%s3429_s8] sm:$0x3] }
 0x262   :  { %1876 = vmatprep.subr.bf16.mxu0 %v2711_v5  ;;  %2064 = vmatpush1.bf16.msra.mxu1 %v2750_v1  ;;  %v1601_v5 = vrot.slane %v1596_v3, %v3081_v2  ;;  %v2317_v2 = vld [vmem:[%s3431_s10] ss:$0 sm:$0xff]  ;;  %s2106_s10 = sshll.u32 %s2834_s9, 4  ;;  %s2107_s10 = int_to_ptr.vmem [resolvable:$true] %s2106_s10 }
 0x263   :  { %s2799_s15 = scalar_lea.vmem %s2107_s10, 128  ;;  %p2804_p3 = scmp.lt.s32.totalorder %s2107_s10, %s2107_s10 }
 0x264   :  { %p2800_p2 = scmp.ne.s32.totalorder %s2107_s10, %s2799_s15  ;;  %p2805_p4 = scmp.lt.s32.totalorder %s2799_s15, %s2799_s15 }
 0x265   :  { %1877 = vmatpush1.bf16.msra.mxu0 %v2709_v6  ;;  %v1605_v6 = vrot.slane %v1596_v3, %v3086_v4 }
 0x266   :  { %1878 = vmatprep.subr.bf16.mxu0 %v2714_v7  ;;  %p2806_p5 = por %p2805_p4, %p2804_p3 }
 0x268   :  { %p2807_p6 = pnand %p2806_p5, %p2800_p2 }
 0x269   :  { %1879 = vmatpush1.bf16.msra.mxu0 %v2712_v8 }
 0x26a   :  { %1889 = vmatprep.subr.bf16.mxu0 %v2717_v9 }
 0x2c1   :  { %v2381_v19 = vpop.f32.mrb[12].mxu0 }
 0x2c2   :  { %v2382_v20 = vpop.f32.mrb[13].mxu0 }
 0x2c3   :  { %v2383_v22 = vadd.f32 %v2382_v20, %v2381_v19  ;;  %v2384_v23 = vpop.f32.mrb[14].mxu0 }
 0x2c4   :  { %v2385_v24 = vpop.f32.mrb[15].mxu0 }
 0x2c5   :  { %v1497_v31 = vadd.f32 %v2383_v22, %v992_v28 }
 0x2ff   :  { %v1455_v32 = vpop.f32.mrb[12].mxu1  ;;  %v1536_v33 = vpop.f32.mrb[16].mxu0 }
 0x300   :  { %v2448_v34 = vadd.f32 %v1455_v32, %v984_v29  ;;  %v1537_v35 = vadd.f32 %v1536_v33, %v1497_v31  ;;  %v1457_v36 = vpop.f32.mrb[13].mxu1  ;;  %v2442_v37 = vpop.f32.mrb[17].mxu0 }
 0x301   :  { %v2449_v10 = vadd.f32 %v1457_v36, %v988_v30  ;;  %v1459_v38 = vpop.f32.mrb[14].mxu1  ;;  %v1539_v39 = vpop.f32.mrb[18].mxu0 }
 0x302   :  { %v1542_v40 = vmax.f32 %v2448_v34, 0.0  ;;  %v1460_v41 = vpop.f32.mrb[15].mxu1  ;;  %v2443_v42 = vpop.f32.mrb[19].mxu0  ;;  %v1544_v60 = vmax.f32 %v1537_v35, 0.0 }
 0x303   :  { %v1543_v43 = vmax.f32 %v2449_v10, 0.0 }
 0x304   :  { %v1545_v45 = vpack.c.bf16 %v1542_v40, %v1542_v40  ;;  %v1547_v61 = vpack.c.bf16 %v1544_v60, %v1544_v60 }
 0x305   :  { %v1546_v44 = vpack.c.bf16 %v1543_v43, %v1543_v43 }
 0x307   :  { %1880 = vmatprep.mubr.bf16.mxu0 %v1546_v44 }
 0x308   :  { %1881 = vmatmul.mubr.bf16.vlgmr.msra.gmra.mrb[20].mxu0 %v1545_v45 }
 0x309   :  { %1890 = vmatpush1.bf16.msra.mxu0 %v2715_v11  ;;  %1921 = vmatprep.mubr.bf16.mxu0 %v2831_v0 }
 0x30a   :  { %1891 = vmatprep.subr.bf16.mxu0 %v2720_v46 }
 0x30d   :  { %1892 = vmatpush1.bf16.msra.mxu0 %v2718_v47 }
 0x30e   :  { %1893 = vmatprep.subr.bf16.mxu0 %v2723_v48 }
 0x311   :  { %1894 = vmatpush1.bf16.msra.mxu0 %v2721_v49 }
 0x312   :  { %1895 = vmatprep.subr.bf16.mxu0 %v2726_v50 }
 0x315   :  { %1896 = vmatpush1.bf16.msra.mxu0 %v2724_v51 }
 0x316   :  { %1897 = vmatprep.subr.bf16.mxu0 %v2729_v52 }
 0x319   :  { %1898 = vmatpush1.bf16.msra.mxu0 %v2727_v53 }
 0x31a   :  { %1899 = vmatprep.subr.bf16.mxu0 %v2732_v54 }
 0x31d   :  { %1900 = vmatpush1.bf16.msra.mxu0 %v2730_v55 }
 0x31e   :  { %1901 = vmatprep.subr.bf16.mxu0 %v2735_v56 }
 0x321   :  { %1902 = vmatpush1.bf16.msra.mxu0 %v2733_v57 }
 0x322   :  { %1903 = vmatprep.subr.bf16.mxu0 %v2738_v58 }
 0x325   :  { %1904 = vmatpush1.bf16.msra.mxu0 %v2736_v59 }
 0x328   :  { %1922 = vmatmul.mubr.bf16.vlgmr.msra.gmra.mrb[20].mxu0 %v1547_v61 }
 0x3fb   :  { %v1923_v7 = vpop.f32.mrb[20].mxu0 }
 0x3fc   :  { %v2450_v8 = vadd.f32 %v1923_v7, %v1601_v5  ;;  %v1925_v9 = vpop.f32.mrb[21].mxu0 }
 0x3fd   :  { %v2451_v12 = vadd.f32 %v1925_v9, %v1605_v6  ;;  %v1927_v13 = vpop.f32.mrb[22].mxu0 }
 0x3fe   :  { %v1930_v14 = vmax.f32 %v2450_v8, 0.0  ;;  %v1928_v0 = vpop.f32.mrb[23].mxu0 }
 0x3ff   :  { %v1931_v15 = vmax.f32 %v2451_v12, 0.0 }
 0x400   :  { %v1932_v17 = vpack.c.bf16 %v1930_v14, %v1930_v14 }
 0x401   :  { %v1933_v16 = vpack.c.bf16 %v1931_v15, %v1931_v15 }
 0x403   :  { %2330 = vmatprep.mubr.msk.bf16.mxu1 %vm2037_vm3, %v1933_v16 }
 0x404   :  { %2074 = vmatmul.mubr.bf16.vlgmr.msra.gmra.mrb[16].mxu1 %v1932_v17 }
 0x4d7   :  { %v2075_v4 = vpop.f32.mrb[16].mxu1 }
 0x4d8   :  { %v2076_v19 = vadd.f32 %v2317_v2, %v2075_v4  ;;  %v2077_v20 = vpop.f32.mrb[17].mxu1 }
 0x4d9   :  { %v2078_v21 = vpop.f32.mrb[18].mxu1 }
 0x4da   :  { %v2079_v22 = vpop.f32.mrb[19].mxu1  ;;  %v2084_v23 = vsel %vm2083_vm4, %v2076_v19, -inf  ;;  %v2097_v32 = vsel %vm2096_vm5, %v2076_v19, 0.0 }
 0x4db   :  { %2085 = vmax.xlane.f32.xlu0 %v2084_v23 }
 0x568   :  { %v2086_v24 = vpop.xlane.xlu0 %2085 }
 0x569   :  { %v2087_v25 = vsub.f32 %v2076_v19, %v2086_v24 }
 0x56b   :  { %v2088_v26 = vmul.f32 1.442695, %v2087_v25 }
 0x56d   :  { %2751 = vpow2.f32 %v2088_v26 }
 0x577   :  { %v2752_v27 = vpop.eup %2751 }
 0x578   :  { %v2090_v63 = vsel %vm2083_vm4, %v2752_v27, 0.0 }
 0x579   :  { %2091 = vadd.xlane.f32.xlu0 %v2090_v63 }
 0x606   :  { %v2092_v28 = vpop.xlane.xlu0 %2091 }
 0x607   :  { %2753 = vlog2.f32 %v2092_v28 }
 0x611   :  { %v2754_v29 = vpop.eup %2753 }
 0x612   :  { %v2094_v30 = vmul.f32 0.6931472, %v2754_v29 }
 0x614   :  { %v2095_v31 = vsub.f32 %v2087_v25, %v2094_v30 }
 0x616   :  { %v2098_v33 = vsel %vm2083_vm4, %v2095_v31, %v2097_v32 }
 0x617   :  { %2099 = vst [vmem:[#allocation7] sm:$0xff] %v2098_v33 }
 0x618   :  { %2810 = shalt.err (!%p2807_p6)
}
 0x619   :  { %s2811_s4 = scalar_lea.hbm %s3432_s11, 128 }
 0x61a   :  { %p2812_p7 = scmp.ne.s32.totalorder %s3432_s11, %s2811_s4  ;;  %p2815_p8 = scmp.lt.u32.totalorder %s2811_s4, %s3432_s11 }
 0x61c   :  { %p2817_p9 = pnand %p2815_p8, %p2812_p7 }
 0x61e   :  { %2820 = shalt.err (!%p2817_p9)
}
 0x61f   :  { %2109 = dma.vmem_to_hbm [thread:$0]  %s2107_s10, 128, %s3432_s11, [#allocation4]  }
 0x620   :  { %2825 = dma.done.wait [#allocation4], 128  }
 0x621   :  { %2826 = vsyncadd [#allocation4], 4294967168 }
 0x622   :  { %2113 = vsyncpa [#allocation3], 1 }
 0x623   :  { %2114 = vsyncpa [#allocation6], 1 }
 0x624   :  { %2115 = vsyncpa [#allocation4], 1 }

</bundles_post_ra>
